<compile_context>
chip_gen: v7x
topology: tpu7x:2x2x1
jax: 0.10.0
libtpu: 0.0.40
codegen_flags: <defaults>
</compile_context>

<pallas_src>
import functools

import jax
import jax.numpy as jnp
from jax.experimental import pallas as pl
from jax.experimental.pallas import tpu as pltpu

LOSS_LAMBDA = 0.1


def _round_up(x, m):
    return ((x + m - 1) // m) * m


def _cdiv(a, b):
    return -(-a // b)


def _my_loss_kernel(x_ref, t_ref, o_ref, acc_ref, *,
                    B, C, tm, cb, btiles, bsteps, inv_c, scale,
                    compute_dtype, vector_acc, multi_c,
                    need_row_mask, need_col_mask, need_blk_guard):
    # x_ref : VMEM (tm, cb) logits tile (native dtype)
    # t_ref : VMEM (tm, 1) int32 labels tile
    # o_ref : SMEM (1, 1) f32 per-core partial (block (p, 0) of an (n_par,1) output)
    # acc_ref: VMEM f32 scratch, (1, cb) (vector mode) or (1, 1) (scalar mode)
    p = pl.program_id(0)
    i = pl.program_id(1)
    j = pl.program_id(2)
    nb = pl.num_programs(1)
    nc = pl.num_programs(2)

    @pl.when((i == 0) & (j == 0))
    def _init():
        acc_ref[...] = jnp.zeros_like(acc_ref)

    blk = p * bsteps + i  # un-clamped batch-tile id for this grid step

    def _accumulate():
        x = x_ref[...].astype(compute_dtype)                    # (tm, cb)
        tgt = t_ref[...]                                        # (tm, 1) i32

        col = jax.lax.broadcasted_iota(jnp.int32, (tm, cb), 1)
        if multi_c:
            col = col + j * cb                                  # global class id
        one_hot = col == tgt

        w = jnp.where(one_hot,
                      jnp.asarray(1.0 - inv_c, compute_dtype),
                      jnp.asarray(-inv_c, compute_dtype))
        contrib = x * w

        mask = None
        if need_row_mask:  # ragged batch edge (rows beyond B are garbage)
            row = jax.lax.broadcasted_iota(jnp.int32, (tm, cb), 0) + blk * tm
            mask = row < B
        if need_col_mask:  # ragged class edge (cols beyond C are garbage)
            cmask = col < C
            mask = cmask if mask is None else (mask & cmask)
        if mask is not None:
            contrib = jnp.where(mask, contrib, jnp.asarray(0, compute_dtype))

        if vector_acc:
            # Column-wise partial sum; widen to f32 only here.
            acc_ref[...] += jnp.sum(contrib, axis=0, keepdims=True,
                                    dtype=jnp.float32)
        else:
            acc_ref[0, 0] += jnp.sum(contrib, dtype=jnp.float32)

    if need_blk_guard:
        # Duplicate batch tiles (odd tile count split over 2 cores) are skipped.
        @pl.when(blk < btiles)
        def _guarded():
            _accumulate()
    else:
        _accumulate()

    @pl.when((i == nb - 1) & (j == nc - 1))
    def _finalize():
        # Single cross-lane reduce + LOSS_LAMBDA/B scale, once per core slice.
        o_ref[0, 0] = jnp.sum(acc_ref[...]) * scale


def my_loss(output, target, *, max_buffer_bytes=None, max_acc_cols=8192):
    """Pallas TPU implementation of My_loss.forward(output, target)."""
    B, C = output.shape
    dt = output.dtype
    isz = jnp.dtype(dt).itemsize
    gran = {4: 8, 2: 16, 1: 32}.get(isz, 8)          # sublane packing granularity

    # bf16 stays bf16 through the elementwise work (VPU-native on v6e/v7x);
    # everything else is done in f32.  Accumulation is always f32.
    compute_dtype = jnp.bfloat16 if dt == jnp.bfloat16 else jnp.float32

    # ---- per-generation VMEM policy -------------------------------------
    vmem_cap = 64 << 20                                # conservative = v7x physical
    try:
        cap = getattr(pltpu.get_tpu_info(), "vmem_capacity_bytes", None)
        if cap:
            vmem_cap = int(cap)
    except Exception:
        pass
    vmem_limit = max(32 << 20, min((vmem_cap * 3) // 4, 96 << 20))
    per_buf = min(12 << 20, vmem_limit // 4)           # per single (logits+labels) buffer
    if max_buffer_bytes is not None:
        per_buf = int(max_buffer_bytes)

    # ---- tile geometry (budgeted with lane-padded bytes) ------------------
    lane = 128
    c_lane_pad = _round_up(C, lane)
    label_row_bytes = lane * 4                         # (tm,1) i32 lane-pads to 128 lanes
    row_bytes = c_lane_pad * isz + label_row_bytes

    if gran * row_bytes <= per_buf:
        cb, csteps = C, 1                              # one class block = full C
        tm = max(gran, (per_buf // row_bytes) // gran * gran)
        tm = min(tm, _round_up(B, gran))
    else:
        # Very large C: class-tile so tile bytes stay bounded independently of C.
        tm = gran
        tc = ((per_buf // gran - label_row_bytes) // isz) // lane * lane
        tc = max(lane, tc)
        if tc >= C:
            cb, csteps = C, 1
        else:
            cb, csteps = tc, _cdiv(C, tc)

    btiles = _cdiv(B, tm)

    # ---- dual-TensorCore split (v7x / megacore); harmless on 1-TC chips ----
    n_par = 2 if btiles >= 2 else 1
    if n_par == 2 and btiles % 2 != 0:
        # Prefer shrinking tm slightly so the tiles split evenly (no waste).
        tm_alt = _round_up(_cdiv(B, btiles + 1), gran)
        if tm_alt >= gran and _cdiv(B, tm_alt) % 2 == 0:
            tm = tm_alt
            btiles = _cdiv(B, tm)
    bsteps = _cdiv(btiles, n_par)
    need_blk_guard = (n_par * bsteps) != btiles

    need_row_mask = (B % tm) != 0
    need_col_mask = (csteps * cb) != C
    vector_acc = cb <= max_acc_cols

    if need_blk_guard:
        def _row_blk(p, i):
            return jnp.minimum(p * bsteps + i, btiles - 1)
    else:
        def _row_blk(p, i):
            return p * bsteps + i

    kernel = functools.partial(
        _my_loss_kernel,
        B=B, C=C, tm=tm, cb=cb, btiles=btiles, bsteps=bsteps,
        inv_c=1.0 / C, scale=LOSS_LAMBDA / B,
        compute_dtype=compute_dtype, vector_acc=vector_acc, multi_c=(csteps > 1),
        need_row_mask=need_row_mask, need_col_mask=need_col_mask,
        need_blk_guard=need_blk_guard)

    acc_shape = (1, cb) if vector_acc else (1, 1)
    targets2d = target.astype(jnp.int32).reshape(B, 1)

    partials = pl.pallas_call(
        kernel,
        out_shape=jax.ShapeDtypeStruct((n_par, 1), jnp.float32),
        grid=(n_par, bsteps, csteps),
        in_specs=[
            pl.BlockSpec((tm, cb), lambda p, i, j: (_row_blk(p, i), j)),
            pl.BlockSpec((tm, 1), lambda p, i, j: (_row_blk(p, i), 0)),
        ],
        out_specs=pl.BlockSpec((1, 1), lambda p, i, j: (p, 0),
                               memory_space=pltpu.SMEM),
        scratch_shapes=[pltpu.VMEM(acc_shape, jnp.float32)],
        compiler_params=pltpu.CompilerParams(
            dimension_semantics=("parallel", "arbitrary", "arbitrary"),
            vmem_limit_bytes=int(vmem_limit)),
    )(output, targets2d)
    return jnp.sum(partials)


def _reference(output, target):
    B, C = output.shape
    out32 = output.astype(jnp.float32)
    j = out32[jnp.arange(B), target]
    i = jnp.mean(out32, axis=1)
    return jnp.sum((j - i) * LOSS_LAMBDA) / B


if __name__ == "__main__":
    root = jax.random.PRNGKey(0)

    def run_case(idx, B, C, dtype=jnp.float32, atol=1e-5, **kwargs):
        k1, k2 = jax.random.split(jax.random.fold_in(root, idx))
        output = jax.random.normal(k1, (B, C), dtype=jnp.float32).astype(dtype)
        target = jax.random.randint(k2, (B,), 0, C, dtype=jnp.int32)
        got = my_loss(output, target, **kwargs)
        jax.block_until_ready(got)
        want = _reference(output, target)
        assert jnp.allclose(got, want, atol=atol), (idx, B, C, got, want)

    # 1. Primary small case (default tiling policy).
    run_case(1, B=8, C=32)
    # 2. Multi-tile batch + dual-core split + ragged-batch row mask.
    run_case(2, B=203, C=40, max_buffer_bytes=8 << 10)
    # 3. Odd batch-tile count -> clamped index map + duplicate-block guard.
    run_case(3, B=72, C=40, max_buffer_bytes=8 << 10)
    # 4. C large relative to budget -> class tiling + ragged-column mask.
    run_case(4, B=64, C=300, max_buffer_bytes=8 << 10)
    # 5. Scalar accumulator mode (very wide class blocks).
    run_case(5, B=16, C=300, max_acc_cols=64)
    # 6. bf16 inputs (bf16-native elementwise path).
    run_case(6, B=64, C=32, dtype=jnp.bfloat16, atol=1e-2)

    print("KERNEL_OK")
</pallas_src>

<mosaic_0001>
module attributes {stable_mosaic.version = 11 : i64} {
  func.func @_my_loss_kernel(%arg0: i32, %arg1: i32, %arg2: i32, %arg3: memref<8x32xf32, #tpu.memory_space<vmem>>, %arg4: memref<8x1xi32, #tpu.memory_space<vmem>>, %arg5: memref<1x1xf32, #tpu.memory_space<smem>>, %arg6: memref<1x32xf32, #tpu.memory_space<vmem>>) attributes {dimension_semantics = [#tpu.dimension_semantics<parallel>, #tpu.dimension_semantics<arbitrary>, #tpu.dimension_semantics<arbitrary>], iteration_bounds = array<i64: 1, 1, 1>, scalar_prefetch = 0 : i64, scratch_operands = 1 : i64, tpu.core_type = #tpu.core_type<tc>, window_params = [{transform_indices = @transform_0, window_bounds = array<i64: 8, 32>}, {transform_indices = @transform_1, window_bounds = array<i64: 8, 1>}, {transform_indices = @transform_2, window_bounds = array<i64: 1, 1>}]} {
    %c0_i32 = arith.constant 0 : i32
    %0 = arith.cmpi eq, %arg1, %c0_i32 : i32
    %c0_i32_0 = arith.constant 0 : i32
    %1 = arith.cmpi eq, %arg2, %c0_i32_0 : i32
    %2 = arith.andi %0, %1 : i1
    %3 = arith.extui %2 : i1 to i32
    %c0_i32_1 = arith.constant 0 : i32
    %4 = arith.cmpi ne, %3, %c0_i32_1 : i32
    scf.if %4 {
      %cst_14 = arith.constant 0.000000e+00 : f32
      %24 = vector.broadcast %cst_14 : f32 to vector<1x32xf32>
      %c0_15 = arith.constant 0 : index
      %c0_16 = arith.constant 0 : index
      %25 = vector.load %arg6[%c0_15, %c0_16] : memref<1x32xf32, #tpu.memory_space<vmem>>, vector<1x32xf32>
      tpu.vector_store %arg6[%c0_15, %c0_16], %24 {strides = array<i32>} : memref<1x32xf32, #tpu.memory_space<vmem>>, vector<1x32xf32>,
    } else {
    }
    %c0 = arith.constant 0 : index
    %c0_2 = arith.constant 0 : index
    %5 = vector.load %arg3[%c0, %c0_2] : memref<8x32xf32, #tpu.memory_space<vmem>>, vector<8x32xf32>
    %c0_3 = arith.constant 0 : index
    %c0_4 = arith.constant 0 : index
    %6 = vector.load %arg4[%c0_3, %c0_4] : memref<8x1xi32, #tpu.memory_space<vmem>>, vector<8x1xi32>
    %7 = tpu.iota {dimensions = array<i32: 1>} : vector<8x32xi32>
    %8 = vector.broadcast %6 : vector<8x1xi32> to vector<8x32xi32>
    %9 = arith.cmpi eq, %7, %8 : vector<8x32xi32>
    %cst = arith.constant 9.687500e-01 : f32
    %cst_5 = arith.constant -3.125000e-02 : f32
    %10 = vector.broadcast %cst : f32 to vector<8x32xf32>
    %11 = vector.broadcast %cst_5 : f32 to vector<8x32xf32>
    %12 = arith.select %9, %10, %11 : vector<8x32xi1>, vector<8x32xf32>
    %13 = arith.mulf %5, %12 : vector<8x32xf32>
    %c0_6 = arith.constant 0 : index
    %c0_7 = arith.constant 0 : index
    %14 = vector.load %arg6[%c0_6, %c0_7] : memref<1x32xf32, #tpu.memory_space<vmem>>, vector<1x32xf32>
    %cst_8 = arith.constant dense<0.000000e+00> : vector<32xf32>
    %15 = vector.multi_reduction <add>, %13, %cst_8 [0] : vector<8x32xf32> to vector<32xf32>
    %16 = vector.shape_cast %15 : vector<32xf32> to vector<1x32xf32>
    %17 = arith.addf %14, %16 : vector<1x32xf32>
    %c0_9 = arith.constant 0 : index
    %c0_10 = arith.constant 0 : index
    %18 = vector.load %arg6[%c0_9, %c0_10] : memref<1x32xf32, #tpu.memory_space<vmem>>, vector<1x32xf32>
    tpu.vector_store %arg6[%c0_9, %c0_10], %17 {strides = array<i32>} : memref<1x32xf32, #tpu.memory_space<vmem>>, vector<1x32xf32>,
    %c0_i32_11 = arith.constant 0 : i32
    %19 = arith.cmpi eq, %arg1, %c0_i32_11 : i32
    %c0_i32_12 = arith.constant 0 : i32
    %20 = arith.cmpi eq, %arg2, %c0_i32_12 : i32
    %21 = arith.andi %19, %20 : i1
    %22 = arith.extui %21 : i1 to i32
    %c0_i32_13 = arith.constant 0 : i32
    %23 = arith.cmpi ne, %22, %c0_i32_13 : i32
    scf.if %23 {
      %c0_14 = arith.constant 0 : index
      %c0_15 = arith.constant 0 : index
      %24 = vector.load %arg6[%c0_14, %c0_15] : memref<1x32xf32, #tpu.memory_space<vmem>>, vector<1x32xf32>
      %25 = vector.shape_cast %24 : vector<1x32xf32> to vector<1x1x32xf32>
      %cst_16 = arith.constant dense<0.000000e+00> : vector<1xf32>
      %26 = vector.multi_reduction <add>, %25, %cst_16 [1, 2] : vector<1x1x32xf32> to vector<1xf32>
      %27 = vector.shape_cast %26 : vector<1xf32> to vector<1x1x1xf32>
      %28 = vector.extract %27[0, 0, 0] : f32 from vector<1x1x1xf32>
      %cst_17 = arith.constant 1.250000e-02 : f32
      %29 = arith.mulf %28, %cst_17 : f32
      %c0_18 = arith.constant 0 : index
      %c0_19 = arith.constant 0 : index
      %30 = memref.load %arg5[%c0_18, %c0_19] : memref<1x1xf32, #tpu.memory_space<smem>>
      memref.store %29, %arg5[%c0_18, %c0_19] : memref<1x1xf32, #tpu.memory_space<smem>>
    } else {
    }
    return
  }
  func.func @transform_0(%arg0: i32, %arg1: i32, %arg2: i32) -> (i32, i32) {
    %c1_i32 = arith.constant 1 : i32
    %0 = arith.muli %arg0, %c1_i32 : i32
    %1 = arith.addi %0, %arg1 : i32
    %c0_i32 = arith.constant 0 : i32
    return %1, %arg2 : i32, i32
  }
  func.func @transform_1(%arg0: i32, %arg1: i32, %arg2: i32) -> (i32, i32) {
    %c1_i32 = arith.constant 1 : i32
    %0 = arith.muli %arg0, %c1_i32 : i32
    %1 = arith.addi %0, %arg1 : i32
    %c0_i32 = arith.constant 0 : i32
    %c0_i32_0 = arith.constant 0 : i32
    return %1, %c0_i32 : i32, i32
  }
  func.func @transform_2(%arg0: i32, %arg1: i32, %arg2: i32) -> (i32, i32) {
    %c0_i32 = arith.constant 0 : i32
    %c0_i32_0 = arith.constant 0 : i32
    return %arg0, %c0_i32 : i32, i32
  }
}

</mosaic_0001>

<bundles_post_ra>
// kernel: tpu_custom_call.1
= control target key start
LH: loop header
LB: loop body
LE: loop exit
PB: predicated region body
PF: predicated region fallthrough
CT: control target
= control target key end

     0   :  { %s176_s0 = inlined_call_operand.vmem [shape: f32[8,32], index: 0, kind: input, shape index: {}]   ;;  %s177_s1 = inlined_call_operand.vmem [shape: s32[8,1], index: 1, kind: input, shape index: {}]   ;;  %s178_s2 = inlined_call_operand.hbm [shape: f32[1,1], index: 2, kind: output, shape index: {}]  }
   0x1   :  { %v55_v0 = vld [vmem:[%s177_s1] sm:$0xff] }
   0x2   :  { %7 = vsyncpa [#allocation4], 0  ;;  %v136_v1 = vmov 0   ;;  %vm52_vm0 = vcmask 253952   ;;  %v137_v2 = vmov 0.0   ;;  %v56_v3 = vlaneseq  ;;  %v54_v6 = vld [vmem:[%s176_s0] sm:$0xff] }
   0x3   :  { %123 = vset.pattern.permute.xlu0 %v136_v1  ;;  %53 = vst.msk [vmem:[#allocation2] sm:$0x1] %vm52_vm0, %v137_v2  ;;  %vm65_vm2 = vcmask 261120   ;;  %v138_v7 = vmov -0.03125   ;;  %s124_s15 = scalar_lea.hbm %s178_s2, 16 }
   0x4   :  { %59 = vperm.xlu0 %123, %v55_v0   ;;  %v57_v4 = vand.u32 127, %v56_v3  ;;  %p125_p0 = scmp.ne.s32.totalorder %s178_s2, %s124_s15  ;;  %p128_p1 = scmp.lt.u32.totalorder %s124_s15, %s178_s2 }
   0x6   :  { %p130_p2 = pnand %p128_p1, %p125_p0 }
   0xa   :  { %v64_v16 = vld [vmem:[#allocation2] sm:$0x1] }
  0x83   :  { %v60_v5 = vpop.permute.xlu0 %59 }
  0x84   :  { %vm61_vm1 = vcmp.eq.s32.totalorder %v57_v4, %v60_v5 }
  0x85   :  { %v62_v8 = vsel %vm61_vm1, 0.96875, %v138_v7 }
  0x86   :  { %v63_v9 = vmul.f32 %v62_v8, %v54_v6 }
  0x88   :  { %v66_v10 = vsel %vm65_vm2, %v63_v9, 0.0 }
  0x89   :  { %v67_v11 = vrot.slane %v66_v10, 4 }
  0x8b   :  { %v68_v12 = vadd.f32 %v67_v11, %v66_v10 }
  0x8d   :  { %v69_v13 = vrot.slane %v68_v12, 2 }
  0x8f   :  { %v70_v14 = vadd.f32 %v69_v13, %v68_v12 }
  0x91   :  { %v71_v15 = vrot.slane %v70_v14, 1 }
  0x93   :  { %v72_v17 = vadd.f32 %v71_v15, %v70_v14 }
  0x95   :  { %v73_v18 = vadd.f32 %v72_v17, %v64_v16 }
  0x97   :  { %75 = vst.msk [vmem:[#allocation2] sm:$0x1] %vm52_vm0, %v73_v18 }
  0x9e   :  { %v78_v19 = vld [vmem:[#allocation2] sm:$0x1] }
  0x9f   :  { %v79_v20 = vsel %vm52_vm0, %v78_v19, 0.0 }
  0xa0   :  { %80 = vadd.xlane.f32.xlu0 %v79_v20 }
 0x12d   :  { %v81_v21 = vpop.xlane.xlu0 %80 }
 0x12e   :  { %v82_v22 = vrot.slane %v81_v21, 4 }
 0x130   :  { %v83_v23 = vadd.f32 %v82_v22, %v81_v21 }
 0x132   :  { %v84_v24 = vrot.slane %v83_v23, 2 }
 0x134   :  { %v85_v25 = vadd.f32 %v84_v24, %v83_v23 }
 0x136   :  { %v86_v26 = vrot.slane %v85_v25, 1 }
 0x138   :  { %v87_v27 = vadd.f32 %v86_v26, %v85_v25 }
 0x13a   :  { %117 = vpush %v87_v27 }
 0x16b   :  { %s118_s0 = spop %117 }
 0x16c   :  { %s89_s1 = smul.f32 0.0125, %s118_s0 }
 0x16e   :  { %91 = sst [smem:[#allocation3]] %s89_s1 }
 0x16f   :  { %133 = shalt.err (!%p130_p2)
}
 0x170   :  { %s139_s20 = smov [#allocation3]  }
 0x171   :  { %99 = dma.smem_to_hbm %s139_s20, 16, %s178_s2, [#allocation4]  }
 0x172   :  { %134 = dma.done.wait [#allocation4], 16  }
 0x173   :  { %135 = vsyncadd [#allocation4], 4294967280 }
 0x174   :  { %103 = sfence }
 0x175   :  { %104 = vsyncpa [#allocation4], 1 }

</bundles_post_ra>
